<compile_context>
chip_gen: v6e
topology: v6e:2x2x1
jax: 0.10.0
libtpu: 0.0.40
codegen_flags: <defaults>
</compile_context>

<pallas_src>
import functools

import jax
import jax.numpy as jnp
from jax.experimental import pallas as pl
from jax.experimental.pallas import tpu as pltpu

LANE = 128
SUBLANE = 8
_MIN_SPLIT_ROWS = 256   # split a single-step grid in two only if each half >= this


def _round_up(x, m):
    return ((x + m - 1) // m) * m


def mlp_kernel(x_ref,
               w1, b1, w2, b2, w3, b3, w4, b4, w5, b5, w6, b6,
               o_ref):
    """Whole 6-layer MLP forward for one batch tile, entirely in VMEM.

    x_ref : (tile, in_dim)     f32  (in_dim tiny, unpadded)
    w1    : (in_dim, 128)      bf16 (cols zero-padded)
    w2-w6 : (128, 128)         bf16 (rows/cols zero-padded)
    b1-b6 : (1, 128)           f32  (zero-padded)
    o_ref : (tile, final_dim)  f32  (final_dim unpadded)
    """
    w_dtype = w1.dtype

    # ---- layer 1: in_dim is tiny & unpadded -> unrolled broadcast-FMA (VPU).
    # bf16 operand rounding + f32 products/accumulation == bf16 MXU semantics.
    x = x_ref[...].astype(w_dtype)                       # (tile, in_dim)
    in_dim = x.shape[-1]
    acc = x[:, 0:1].astype(jnp.float32) * w1[0:1, :].astype(jnp.float32)
    for k in range(1, in_dim):                           # static, tiny unroll
        acc += x[:, k:k + 1].astype(jnp.float32) * w1[k:k + 1, :].astype(jnp.float32)
    h = jnp.maximum(acc + b1[...], 0.0).astype(w_dtype)  # (tile, 128) bf16

    # ---- layers 2-5: 128x128 bf16 MXU dots, f32 accumulation, f32 bias+ReLU,
    # single downcast so the inter-layer activation lives in bf16.
    def dense_relu(h, w_ref, b_ref):
        y = jnp.dot(h, w_ref[...], preferred_element_type=jnp.float32) + b_ref[...]
        return jnp.maximum(y, 0.0).astype(w_dtype)

    h = dense_relu(h, w2, b2)
    h = dense_relu(h, w3, b3)
    h = dense_relu(h, w4, b4)
    h = dense_relu(h, w5, b5)

    # ---- final layer: full 128-wide MXU matmul, then store only the real
    # output lanes (o_ref last dim == final_dim -> ~64x less HBM write traffic).
    y = jnp.dot(h, w6[...], preferred_element_type=jnp.float32) + b6[...]
    o_ref[...] = y[:, :o_ref.shape[-1]].astype(o_ref.dtype)


def prepare_params(params, use_bf16=True):
    """Pad/cast parameters ONCE (not inside every forward call).

    params: list of (W(in, out) f32, b(1, out) f32) per layer (weights already
    stored transposed to (in, out)).  Layer-0's input dim stays unpadded; all
    other dims are zero-padded to 128 lanes.  Zero padding keeps the math
    exact: padded weight cols + zero bias -> zero activations, ReLU(0)=0, and
    the padded rows of the next layer's weight multiply only those zeros.
    """
    w_dtype = jnp.bfloat16 if use_bf16 else jnp.float32
    flat = []
    for li, (w, b) in enumerate(params):
        b = jnp.asarray(b).reshape(1, -1)
        rows = w.shape[0] if li == 0 else _round_up(w.shape[0], LANE)
        cols = _round_up(w.shape[1], LANE)
        wp = jnp.pad(w, ((0, rows - w.shape[0]), (0, cols - w.shape[1]))).astype(w_dtype)
        bp = jnp.pad(b, ((0, 0), (0, cols - b.shape[1]))).astype(jnp.float32)
        flat += [wp, bp]
    return tuple(flat)


@functools.partial(jax.jit, static_argnames=("final_dim", "batch_tile"))
def mlp_forward(x, flat_params, *, final_dim, batch_tile=1024):
    """x: (B, in_dim) f32.  flat_params: output of prepare_params()."""
    B, in_dim = x.shape
    assert flat_params[0].shape[0] == in_dim, "x feature dim must match layer-1 weight"

    # ---- batch tiling: near-zero padding waste + >=2 grid steps when the
    # batch is big enough ("parallel" axis shards across v7x's 2 TensorCores).
    B_sub = _round_up(B, SUBLANE)
    ntiles = max(1, -(-B_sub // batch_tile))
    if ntiles == 1 and B_sub >= 2 * _MIN_SPLIT_ROWS:
        ntiles = 2
    tile = _round_up(-(-B_sub // ntiles), SUBLANE)
    B_pad = ntiles * tile
    x_p = x if B_pad == B else jnp.pad(x, ((0, B_pad - B), (0, 0)))

    # Input block keeps the tiny unpadded lane dim (== full array dim, legal);
    # param specs use constant index maps -> resident in VMEM, never re-DMA'd.
    in_specs = [pl.BlockSpec((tile, in_dim), lambda i: (i, 0))]
    in_specs += [pl.BlockSpec(p.shape, lambda i: (0, 0)) for p in flat_params]
    out_specs = pl.BlockSpec((tile, final_dim), lambda i: (i, 0))

    # Advisory cost hint for the XLA scheduler.
    w_arrays = flat_params[0::2]
    flops = 2 * B_pad * sum(int(w.shape[0]) * int(w.shape[1]) for w in w_arrays)
    bytes_accessed = (B_pad * in_dim * x.dtype.itemsize
                      + B_pad * final_dim * 4
                      + sum(int(p.size) * p.dtype.itemsize for p in flat_params))

    out = pl.pallas_call(
        mlp_kernel,
        out_shape=jax.ShapeDtypeStruct((B_pad, final_dim), jnp.float32),
        grid_spec=pl.GridSpec(grid=(ntiles,), in_specs=in_specs,
                              out_specs=out_specs),
        compiler_params=pltpu.CompilerParams(
            dimension_semantics=("parallel",),
            # 32 MiB is safe on every generation (v7x has only 64 MiB VMEM);
            # with unpadded input/output blocks even tile=4096 needs only a
            # few MiB here.
            vmem_limit_bytes=32 * 1024 * 1024),
        cost_estimate=pl.CostEstimate(flops=flops, transcendentals=0,
                                      bytes_accessed=bytes_accessed),
    )(x_p, *flat_params)

    return out if B_pad == B else out[:B]


def init_mlp_params(key, init_dim, final_dim):
    """Deterministic init mirroring nn.Linear default (uniform +/- 1/sqrt(fan_in)).

    Returns weights already transposed to (in, out) and biases as (1, out).
    """
    dims = [init_dim, 32, 64, 128, 64, 32, final_dim]
    params = []
    for fan_in, fan_out in zip(dims[:-1], dims[1:]):
        key, kw, kb = jax.random.split(key, 3)
        bound = 1.0 / jnp.sqrt(jnp.float32(fan_in))
        w = jax.random.uniform(kw, (fan_in, fan_out), jnp.float32,
                               minval=-bound, maxval=bound)
        b = jax.random.uniform(kb, (1, fan_out), jnp.float32,
                               minval=-bound, maxval=bound)
        params.append((w, b))
    return params


def mlp_reference(x, params, use_bf16=True):
    """Pure-JAX reference replicating the kernel's bf16-operand / f32-accum dots."""
    dt = jnp.bfloat16 if use_bf16 else jnp.float32
    h = x
    for i, (w, b) in enumerate(params):
        h = jnp.dot(h.astype(dt), w.astype(dt),
                    preferred_element_type=jnp.float32) + b
        if i < len(params) - 1:
            h = jnp.maximum(h, 0.0)
    return h


if __name__ == "__main__":
    key = jax.random.PRNGKey(0)
    k_params, k_x = jax.random.split(key)

    init_dim, final_dim = 4, 2
    batch = 16

    params = init_mlp_params(k_params, init_dim, final_dim)
    prepared = prepare_params(params, use_bf16=True)     # pad/cast once
    x = jax.random.normal(k_x, (batch, init_dim), jnp.float32)

    out = jax.block_until_ready(mlp_forward(x, prepared, final_dim=final_dim))
    ref = mlp_reference(x, params, use_bf16=True)

    assert out.shape == (batch, final_dim)
    assert jnp.allclose(out, ref, atol=1e-3, rtol=1e-3), "mismatch vs reference"

    print("KERNEL_OK")
</pallas_src>

<mosaic_0001>
module attributes {stable_mosaic.version = 11 : i64} {
  func.func @mlp_kernel(%arg0: i32, %arg1: memref<16x4xf32, #tpu.memory_space<vmem>>, %arg2: memref<4x128xbf16, #tpu.memory_space<vmem>>, %arg3: memref<1x128xf32, #tpu.memory_space<vmem>>, %arg4: memref<128x128xbf16, #tpu.memory_space<vmem>>, %arg5: memref<1x128xf32, #tpu.memory_space<vmem>>, %arg6: memref<128x128xbf16, #tpu.memory_space<vmem>>, %arg7: memref<1x128xf32, #tpu.memory_space<vmem>>, %arg8: memref<128x128xbf16, #tpu.memory_space<vmem>>, %arg9: memref<1x128xf32, #tpu.memory_space<vmem>>, %arg10: memref<128x128xbf16, #tpu.memory_space<vmem>>, %arg11: memref<1x128xf32, #tpu.memory_space<vmem>>, %arg12: memref<128x128xbf16, #tpu.memory_space<vmem>>, %arg13: memref<1x128xf32, #tpu.memory_space<vmem>>, %arg14: memref<16x2xf32, #tpu.memory_space<vmem>>) attributes {dimension_semantics = [#tpu.dimension_semantics<parallel>], iteration_bounds = array<i64: 1>, scalar_prefetch = 0 : i64, scratch_operands = 0 : i64, tpu.core_type = #tpu.core_type<tc>, window_params = [{transform_indices = @transform_0, window_bounds = array<i64: 16, 4>}, {pipeline_mode = #tpu.pipeline_mode<synchronous>, transform_indices = @transform_1, window_bounds = array<i64: 4, 128>}, {pipeline_mode = #tpu.pipeline_mode<synchronous>, transform_indices = @transform_2, window_bounds = array<i64: 1, 128>}, {pipeline_mode = #tpu.pipeline_mode<synchronous>, transform_indices = @transform_3, window_bounds = array<i64: 128, 128>}, {pipeline_mode = #tpu.pipeline_mode<synchronous>, transform_indices = @transform_4, window_bounds = array<i64: 1, 128>}, {pipeline_mode = #tpu.pipeline_mode<synchronous>, transform_indices = @transform_5, window_bounds = array<i64: 128, 128>}, {pipeline_mode = #tpu.pipeline_mode<synchronous>, transform_indices = @transform_6, window_bounds = array<i64: 1, 128>}, {pipeline_mode = #tpu.pipeline_mode<synchronous>, transform_indices = @transform_7, window_bounds = array<i64: 128, 128>}, {pipeline_mode = #tpu.pipeline_mode<synchronous>, transform_indices = @transform_8, window_bounds = array<i64: 1, 128>}, {pipeline_mode = #tpu.pipeline_mode<synchronous>, transform_indices = @transform_9, window_bounds = array<i64: 128, 128>}, {pipeline_mode = #tpu.pipeline_mode<synchronous>, transform_indices = @transform_10, window_bounds = array<i64: 1, 128>}, {pipeline_mode = #tpu.pipeline_mode<synchronous>, transform_indices = @transform_11, window_bounds = array<i64: 128, 128>}, {pipeline_mode = #tpu.pipeline_mode<synchronous>, transform_indices = @transform_12, window_bounds = array<i64: 1, 128>}, {transform_indices = @transform_13, window_bounds = array<i64: 16, 2>}]} {
    %c0 = arith.constant 0 : index
    %c0_0 = arith.constant 0 : index
    %0 = vector.load %arg1[%c0, %c0_0] : memref<16x4xf32, #tpu.memory_space<vmem>>, vector<16x4xf32>
    %1 = arith.truncf %0 : vector<16x4xf32> to vector<16x4xbf16>
    %2 = vector.extract_strided_slice %1 {offsets = [0, 0], sizes = [16, 1], strides = [1, 1]} : vector<16x4xbf16> to vector<16x1xbf16>
    %3 = arith.extf %2 : vector<16x1xbf16> to vector<16x1xf32>
    %c0_1 = arith.constant 0 : index
    %c0_2 = arith.constant 0 : index
    %4 = vector.load %arg2[%c0_1, %c0_2] : memref<4x128xbf16, #tpu.memory_space<vmem>>, vector<1x128xbf16>
    %5 = arith.extf %4 : vector<1x128xbf16> to vector<1x128xf32>
    %6 = vector.broadcast %3 : vector<16x1xf32> to vector<16x128xf32>
    %7 = vector.broadcast %5 : vector<1x128xf32> to vector<16x128xf32>
    %8 = arith.mulf %6, %7 : vector<16x128xf32>
    %9 = vector.extract_strided_slice %1 {offsets = [0, 1], sizes = [16, 1], strides = [1, 1]} : vector<16x4xbf16> to vector<16x1xbf16>
    %10 = arith.extf %9 : vector<16x1xbf16> to vector<16x1xf32>
    %c1 = arith.constant 1 : index
    %c0_3 = arith.constant 0 : index
    %11 = vector.load %arg2[%c1, %c0_3] : memref<4x128xbf16, #tpu.memory_space<vmem>>, vector<1x128xbf16>
    %12 = arith.extf %11 : vector<1x128xbf16> to vector<1x128xf32>
    %13 = vector.broadcast %10 : vector<16x1xf32> to vector<16x128xf32>
    %14 = vector.broadcast %12 : vector<1x128xf32> to vector<16x128xf32>
    %15 = arith.mulf %13, %14 : vector<16x128xf32>
    %16 = arith.addf %8, %15 : vector<16x128xf32>
    %17 = vector.extract_strided_slice %1 {offsets = [0, 2], sizes = [16, 1], strides = [1, 1]} : vector<16x4xbf16> to vector<16x1xbf16>
    %18 = arith.extf %17 : vector<16x1xbf16> to vector<16x1xf32>
    %c2 = arith.constant 2 : index
    %c0_4 = arith.constant 0 : index
    %19 = vector.load %arg2[%c2, %c0_4] : memref<4x128xbf16, #tpu.memory_space<vmem>>, vector<1x128xbf16>
    %20 = arith.extf %19 : vector<1x128xbf16> to vector<1x128xf32>
    %21 = vector.broadcast %18 : vector<16x1xf32> to vector<16x128xf32>
    %22 = vector.broadcast %20 : vector<1x128xf32> to vector<16x128xf32>
    %23 = arith.mulf %21, %22 : vector<16x128xf32>
    %24 = arith.addf %16, %23 : vector<16x128xf32>
    %25 = vector.extract_strided_slice %1 {offsets = [0, 3], sizes = [16, 1], strides = [1, 1]} : vector<16x4xbf16> to vector<16x1xbf16>
    %26 = arith.extf %25 : vector<16x1xbf16> to vector<16x1xf32>
    %c3 = arith.constant 3 : index
    %c0_5 = arith.constant 0 : index
    %27 = vector.load %arg2[%c3, %c0_5] : memref<4x128xbf16, #tpu.memory_space<vmem>>, vector<1x128xbf16>
    %28 = arith.extf %27 : vector<1x128xbf16> to vector<1x128xf32>
    %29 = vector.broadcast %26 : vector<16x1xf32> to vector<16x128xf32>
    %30 = vector.broadcast %28 : vector<1x128xf32> to vector<16x128xf32>
    %31 = arith.mulf %29, %30 : vector<16x128xf32>
    %32 = arith.addf %24, %31 : vector<16x128xf32>
    %c0_6 = arith.constant 0 : index
    %c0_7 = arith.constant 0 : index
    %33 = vector.load %arg3[%c0_6, %c0_7] : memref<1x128xf32, #tpu.memory_space<vmem>>, vector<1x128xf32>
    %34 = vector.broadcast %33 : vector<1x128xf32> to vector<16x128xf32>
    %35 = arith.addf %32, %34 : vector<16x128xf32>
    %cst = arith.constant 0.000000e+00 : f32
    %36 = vector.broadcast %cst : f32 to vector<16x128xf32>
    %37 = arith.maximumf %35, %36 : vector<16x128xf32>
    %38 = arith.truncf %37 : vector<16x128xf32> to vector<16x128xbf16>
    %c0_8 = arith.constant 0 : index
    %c0_9 = arith.constant 0 : index
    %39 = vector.load %arg4[%c0_8, %c0_9] : memref<128x128xbf16, #tpu.memory_space<vmem>>, vector<128x128xbf16>
    %cst_10 = arith.constant dense<0.000000e+00> : vector<16x128xf32>
    %40 = tpu.matmul %38, %39, %cst_10 {dimension_numbers = #tpu.dot_dimension_numbers<[1], [0], [0], [1], [0, 0, 1, 1], [], []>} : vector<16x128xbf16>, vector<128x128xbf16>, vector<16x128xf32> -> vector<16x128xf32>
    %c0_11 = arith.constant 0 : index
    %c0_12 = arith.constant 0 : index
    %41 = vector.load %arg5[%c0_11, %c0_12] : memref<1x128xf32, #tpu.memory_space<vmem>>, vector<1x128xf32>
    %42 = vector.broadcast %41 : vector<1x128xf32> to vector<16x128xf32>
    %43 = arith.addf %40, %42 : vector<16x128xf32>
    %cst_13 = arith.constant 0.000000e+00 : f32
    %44 = vector.broadcast %cst_13 : f32 to vector<16x128xf32>
    %45 = arith.maximumf %43, %44 : vector<16x128xf32>
    %46 = arith.truncf %45 : vector<16x128xf32> to vector<16x128xbf16>
    %c0_14 = arith.constant 0 : index
    %c0_15 = arith.constant 0 : index
    %47 = vector.load %arg6[%c0_14, %c0_15] : memref<128x128xbf16, #tpu.memory_space<vmem>>, vector<128x128xbf16>
    %cst_16 = arith.constant dense<0.000000e+00> : vector<16x128xf32>
    %48 = tpu.matmul %46, %47, %cst_16 {dimension_numbers = #tpu.dot_dimension_numbers<[1], [0], [0], [1], [0, 0, 1, 1], [], []>} : vector<16x128xbf16>, vector<128x128xbf16>, vector<16x128xf32> -> vector<16x128xf32>
    %c0_17 = arith.constant 0 : index
    %c0_18 = arith.constant 0 : index
    %49 = vector.load %arg7[%c0_17, %c0_18] : memref<1x128xf32, #tpu.memory_space<vmem>>, vector<1x128xf32>
    %50 = vector.broadcast %49 : vector<1x128xf32> to vector<16x128xf32>
    %51 = arith.addf %48, %50 : vector<16x128xf32>
    %cst_19 = arith.constant 0.000000e+00 : f32
    %52 = vector.broadcast %cst_19 : f32 to vector<16x128xf32>
    %53 = arith.maximumf %51, %52 : vector<16x128xf32>
    %54 = arith.truncf %53 : vector<16x128xf32> to vector<16x128xbf16>
    %c0_20 = arith.constant 0 : index
    %c0_21 = arith.constant 0 : index
    %55 = vector.load %arg8[%c0_20, %c0_21] : memref<128x128xbf16, #tpu.memory_space<vmem>>, vector<128x128xbf16>
    %cst_22 = arith.constant dense<0.000000e+00> : vector<16x128xf32>
    %56 = tpu.matmul %54, %55, %cst_22 {dimension_numbers = #tpu.dot_dimension_numbers<[1], [0], [0], [1], [0, 0, 1, 1], [], []>} : vector<16x128xbf16>, vector<128x128xbf16>, vector<16x128xf32> -> vector<16x128xf32>
    %c0_23 = arith.constant 0 : index
    %c0_24 = arith.constant 0 : index
    %57 = vector.load %arg9[%c0_23, %c0_24] : memref<1x128xf32, #tpu.memory_space<vmem>>, vector<1x128xf32>
    %58 = vector.broadcast %57 : vector<1x128xf32> to vector<16x128xf32>
    %59 = arith.addf %56, %58 : vector<16x128xf32>
    %cst_25 = arith.constant 0.000000e+00 : f32
    %60 = vector.broadcast %cst_25 : f32 to vector<16x128xf32>
    %61 = arith.maximumf %59, %60 : vector<16x128xf32>
    %62 = arith.truncf %61 : vector<16x128xf32> to vector<16x128xbf16>
    %c0_26 = arith.constant 0 : index
    %c0_27 = arith.constant 0 : index
    %63 = vector.load %arg10[%c0_26, %c0_27] : memref<128x128xbf16, #tpu.memory_space<vmem>>, vector<128x128xbf16>
    %cst_28 = arith.constant dense<0.000000e+00> : vector<16x128xf32>
    %64 = tpu.matmul %62, %63, %cst_28 {dimension_numbers = #tpu.dot_dimension_numbers<[1], [0], [0], [1], [0, 0, 1, 1], [], []>} : vector<16x128xbf16>, vector<128x128xbf16>, vector<16x128xf32> -> vector<16x128xf32>
    %c0_29 = arith.constant 0 : index
    %c0_30 = arith.constant 0 : index
    %65 = vector.load %arg11[%c0_29, %c0_30] : memref<1x128xf32, #tpu.memory_space<vmem>>, vector<1x128xf32>
    %66 = vector.broadcast %65 : vector<1x128xf32> to vector<16x128xf32>
    %67 = arith.addf %64, %66 : vector<16x128xf32>
    %cst_31 = arith.constant 0.000000e+00 : f32
    %68 = vector.broadcast %cst_31 : f32 to vector<16x128xf32>
    %69 = arith.maximumf %67, %68 : vector<16x128xf32>
    %70 = arith.truncf %69 : vector<16x128xf32> to vector<16x128xbf16>
    %c0_32 = arith.constant 0 : index
    %c0_33 = arith.constant 0 : index
    %71 = vector.load %arg12[%c0_32, %c0_33] : memref<128x128xbf16, #tpu.memory_space<vmem>>, vector<128x128xbf16>
    %cst_34 = arith.constant dense<0.000000e+00> : vector<16x128xf32>
    %72 = tpu.matmul %70, %71, %cst_34 {dimension_numbers = #tpu.dot_dimension_numbers<[1], [0], [0], [1], [0, 0, 1, 1], [], []>} : vector<16x128xbf16>, vector<128x128xbf16>, vector<16x128xf32> -> vector<16x128xf32>
    %c0_35 = arith.constant 0 : index
    %c0_36 = arith.constant 0 : index
    %73 = vector.load %arg13[%c0_35, %c0_36] : memref<1x128xf32, #tpu.memory_space<vmem>>, vector<1x128xf32>
    %74 = vector.broadcast %73 : vector<1x128xf32> to vector<16x128xf32>
    %75 = arith.addf %72, %74 : vector<16x128xf32>
    %76 = vector.extract_strided_slice %75 {offsets = [0, 0], sizes = [16, 2], strides = [1, 1]} : vector<16x128xf32> to vector<16x2xf32>
    %c0_37 = arith.constant 0 : index
    %c0_38 = arith.constant 0 : index
    %77 = vector.load %arg14[%c0_37, %c0_38] : memref<16x2xf32, #tpu.memory_space<vmem>>, vector<16x2xf32>
    tpu.vector_store %arg14[%c0_37, %c0_38], %76 {strides = array<i32>} : memref<16x2xf32, #tpu.memory_space<vmem>>, vector<16x2xf32>,
    return
  }
  func.func @transform_0(%arg0: i32) -> (i32, i32) {
    %c0_i32 = arith.constant 0 : i32
    %c0_i32_0 = arith.constant 0 : i32
    return %arg0, %c0_i32 : i32, i32
  }
  func.func @transform_1(%arg0: i32) -> (i32, i32) {
    %c0_i32 = arith.constant 0 : i32
    %c0_i32_0 = arith.constant 0 : i32
    %c0_i32_1 = arith.constant 0 : i32
    return %c0_i32, %c0_i32_0 : i32, i32
  }
  func.func @transform_2(%arg0: i32) -> (i32, i32) {
    %c0_i32 = arith.constant 0 : i32
    %c0_i32_0 = arith.constant 0 : i32
    %c0_i32_1 = arith.constant 0 : i32
    return %c0_i32, %c0_i32_0 : i32, i32
  }
  func.func @transform_3(%arg0: i32) -> (i32, i32) {
    %c0_i32 = arith.constant 0 : i32
    %c0_i32_0 = arith.constant 0 : i32
    %c0_i32_1 = arith.constant 0 : i32
    return %c0_i32, %c0_i32_0 : i32, i32
  }
  func.func @transform_4(%arg0: i32) -> (i32, i32) {
    %c0_i32 = arith.constant 0 : i32
    %c0_i32_0 = arith.constant 0 : i32
    %c0_i32_1 = arith.constant 0 : i32
    return %c0_i32, %c0_i32_0 : i32, i32
  }
  func.func @transform_5(%arg0: i32) -> (i32, i32) {
    %c0_i32 = arith.constant 0 : i32
    %c0_i32_0 = arith.constant 0 : i32
    %c0_i32_1 = arith.constant 0 : i32
    return %c0_i32, %c0_i32_0 : i32, i32
  }
  func.func @transform_6(%arg0: i32) -> (i32, i32) {
    %c0_i32 = arith.constant 0 : i32
    %c0_i32_0 = arith.constant 0 : i32
    %c0_i32_1 = arith.constant 0 : i32
    return %c0_i32, %c0_i32_0 : i32, i32
  }
  func.func @transform_7(%arg0: i32) -> (i32, i32) {
    %c0_i32 = arith.constant 0 : i32
    %c0_i32_0 = arith.constant 0 : i32
    %c0_i32_1 = arith.constant 0 : i32
    return %c0_i32, %c0_i32_0 : i32, i32
  }
  func.func @transform_8(%arg0: i32) -> (i32, i32) {
    %c0_i32 = arith.constant 0 : i32
    %c0_i32_0 = arith.constant 0 : i32
    %c0_i32_1 = arith.constant 0 : i32
    return %c0_i32, %c0_i32_0 : i32, i32
  }
  func.func @transform_9(%arg0: i32) -> (i32, i32) {
    %c0_i32 = arith.constant 0 : i32
    %c0_i32_0 = arith.constant 0 : i32
    %c0_i32_1 = arith.constant 0 : i32
    return %c0_i32, %c0_i32_0 : i32, i32
  }
  func.func @transform_10(%arg0: i32) -> (i32, i32) {
    %c0_i32 = arith.constant 0 : i32
    %c0_i32_0 = arith.constant 0 : i32
    %c0_i32_1 = arith.constant 0 : i32
    return %c0_i32, %c0_i32_0 : i32, i32
  }
  func.func @transform_11(%arg0: i32) -> (i32, i32) {
    %c0_i32 = arith.constant 0 : i32
    %c0_i32_0 = arith.constant 0 : i32
    %c0_i32_1 = arith.constant 0 : i32
    return %c0_i32, %c0_i32_0 : i32, i32
  }
  func.func @transform_12(%arg0: i32) -> (i32, i32) {
    %c0_i32 = arith.constant 0 : i32
    %c0_i32_0 = arith.constant 0 : i32
    %c0_i32_1 = arith.constant 0 : i32
    return %c0_i32, %c0_i32_0 : i32, i32
  }
  func.func @transform_13(%arg0: i32) -> (i32, i32) {
    %c0_i32 = arith.constant 0 : i32
    %c0_i32_0 = arith.constant 0 : i32
    return %arg0, %c0_i32 : i32, i32
  }
}

</mosaic_0001>

<bundles_post_ra>
// kernel: mlp_forward.1
= control target key start
LH: loop header
LB: loop body
LE: loop exit
PB: predicated region body
PF: predicated region fallthrough
CT: control target
= control target key end

     0   :  { %18 = vsyncpa [#allocation3], 0  ;;  %s1354_s0 = inlined_call_operand.vmem [shape: f32[16,4], index: 0, kind: input, shape index: {}]   ;;  %s1355_s1 = inlined_call_operand.vmem [shape: bf16[4,128], index: 1, kind: input, shape index: {}]   ;;  %s1356_s2 = inlined_call_operand.vmem [shape: f32[1,128], index: 2, kind: input, shape index: {}]   ;;  %s1357_s3 = inlined_call_operand.hbm [shape: bf16[128,128], index: 3, kind: input, shape index: {}]   ;;  %s1358_s4 = inlined_call_operand.vmem [shape: f32[1,128], index: 4, kind: input, shape index: {}]   ;;  %s1359_s5 = inlined_call_operand.hbm [shape: bf16[128,128], index: 5, kind: input, shape index: {}]   ;;  %s1360_s6 = inlined_call_operand.vmem [shape: f32[1,128], index: 6, kind: input, shape index: {}]   ;;  %s1361_s7 = inlined_call_operand.hbm [shape: bf16[128,128], index: 7, kind: input, shape index: {}]   ;;  %s1362_s8 = inlined_call_operand.vmem [shape: f32[1,128], index: 8, kind: input, shape index: {}]   ;;  %s1363_s9 = inlined_call_operand.hbm [shape: bf16[128,128], index: 9, kind: input, shape index: {}]   ;;  %s1364_s10 = inlined_call_operand.vmem [shape: f32[1,128], index: 10, kind: input, shape index: {}]   ;;  %s1365_s11 = inlined_call_operand.hbm [shape: bf16[128,128], index: 11, kind: input, shape index: {}]   ;;  %s1366_s12 = inlined_call_operand.vmem [shape: f32[1,128], index: 12, kind: input, shape index: {}]   ;;  %s1367_s13 = inlined_call_operand.vmem [shape: f32[16,2], index: 13, kind: output, shape index: {}]  }
   0x1   :  { %19 = vsyncpa [#allocation5], 0 }
   0x2   :  { %20 = vsyncpa [#allocation8], 0  ;;  %s1155_s25 = smov [#allocation4]   ;;  %s1156_s27 = smov [#allocation7]  }
   0x3   :  { %s46_s26 = sshll.u32 %s1155_s25, 4  ;;  %s74_s28 = sshll.u32 %s1156_s27, 4  ;;  %s47_s26 = int_to_ptr.vmem [resolvable:$true] %s46_s26  ;;  %s75_s28 = int_to_ptr.vmem [resolvable:$true] %s74_s28 }
   0x4   :  { %s1057_s29 = scalar_lea.vmem %s47_s26, 1024  ;;  %p1062_p1 = scmp.lt.s32.totalorder %s47_s26, %s47_s26 }
   0x5   :  { %p1058_p0 = scmp.ne.s32.totalorder %s47_s26, %s1057_s29  ;;  %p1063_p2 = scmp.lt.s32.totalorder %s1057_s29, %s1057_s29 }
   0x7   :  { %p1064_p3 = por %p1063_p2, %p1062_p1 }
   0x9   :  { %p1065_p4 = pnand %p1064_p3, %p1058_p0 }
   0xb   :  { %1068 = shalt.err (!%p1065_p4)
}
   0xc   :  { %s1157_s30 = smov 64   ;;  %s1158_s14 = smov 4  }
   0xd   :  { %52 = dma.hbm_to_vmem [thread:$0]  %s1359_s5, 1024, %s47_s26, [#allocation5], %s1157_s30, %s1157_s30, %s1158_s14  }
   0xe   :  { %s1077_s17 = scalar_lea.vmem %s75_s28, 1024  ;;  %p1082_p6 = scmp.lt.s32.totalorder %s75_s28, %s75_s28 }
   0xf   :  { %p1078_p5 = scmp.ne.s32.totalorder %s75_s28, %s1077_s17  ;;  %p1083_p7 = scmp.lt.s32.totalorder %s1077_s17, %s1077_s17 }
  0x11   :  { %p1084_p8 = por %p1083_p7, %p1082_p6 }
  0x13   :  { %p1085_p9 = pnand %p1084_p8, %p1078_p5 }
  0x15   :  { %1088 = shalt.err (!%p1085_p9)
}
  0x16   :  { %80 = dma.hbm_to_vmem [thread:$0]  %s1363_s9, 1024, %s75_s28, [#allocation8], %s1157_s30, %s1157_s30, %s1158_s14  }
  0x17   :  { %s1159_s20 = smov [#allocation2]   ;;  %s1160_s22 = smov [#allocation6]  }
  0x18   :  { %s32_s21 = sshll.u32 %s1159_s20, 4  ;;  %s60_s23 = sshll.u32 %s1160_s22, 4  ;;  %s33_s21 = int_to_ptr.vmem [resolvable:$true] %s32_s21  ;;  %s61_s23 = int_to_ptr.vmem [resolvable:$true] %s60_s23 }
  0x19   :  { %s1097_s5 = scalar_lea.vmem %s33_s21, 1024  ;;  %p1102_p11 = scmp.lt.s32.totalorder %s33_s21, %s33_s21 }
  0x1a   :  { %p1098_p10 = scmp.ne.s32.totalorder %s33_s21, %s1097_s5  ;;  %p1103_p12 = scmp.lt.s32.totalorder %s1097_s5, %s1097_s5 }
  0x1c   :  { %p1104_p13 = por %p1103_p12, %p1102_p11 }
  0x1e   :  { %p1105_p0 = pnand %p1104_p13, %p1098_p10 }
  0x20   :  { %1108 = shalt.err (!%p1105_p0)
}
  0x21   :  { %38 = dma.hbm_to_vmem [thread:$0]  %s1357_s3, 1024, %s33_s21, [#allocation3], %s1157_s30, %s1157_s30, %s1158_s14  }
  0x22   :  { %s1117_s9 = scalar_lea.vmem %s61_s23, 1024  ;;  %p1122_p2 = scmp.lt.s32.totalorder %s61_s23, %s61_s23 }
  0x23   :  { %p1118_p1 = scmp.ne.s32.totalorder %s61_s23, %s1117_s9  ;;  %p1123_p3 = scmp.lt.s32.totalorder %s1117_s9, %s1117_s9 }
  0x25   :  { %p1124_p4 = por %p1123_p3, %p1122_p2 }
  0x27   :  { %p1125_p5 = pnand %p1124_p4, %p1118_p1 }
  0x29   :  { %1128 = shalt.err (!%p1125_p5)
}
  0x2a   :  { %66 = dma.hbm_to_vmem [thread:$0]  %s1361_s7, 1024, %s61_s23, [#allocation5], %s1157_s30, %s1157_s30, %s1158_s14  }
  0x2b   :  { %s1161_s28 = smov [#allocation9]  }
  0x2c   :  { %s88_s29 = sshll.u32 %s1161_s28, 4  ;;  %s89_s29 = int_to_ptr.vmem [resolvable:$true] %s88_s29 }
  0x2d   :  { %s1137_s15 = scalar_lea.vmem %s89_s29, 1024  ;;  %p1142_p7 = scmp.lt.s32.totalorder %s89_s29, %s89_s29 }
  0x2e   :  { %p1138_p6 = scmp.ne.s32.totalorder %s89_s29, %s1137_s15  ;;  %p1143_p8 = scmp.lt.s32.totalorder %s1137_s15, %s1137_s15 }
  0x30   :  { %p1144_p9 = por %p1143_p8, %p1142_p7 }
  0x32   :  { %p1145_p10 = pnand %p1144_p9, %p1138_p6 }
  0x34   :  { %1148 = shalt.err (!%p1145_p10)
}
  0x35   :  { %94 = dma.hbm_to_vmem [thread:$0]  %s1365_s11, 1024, %s89_s29, [#allocation8], %s1157_s30, %s1157_s30, %s1158_s14  }
  0x36   :  { %1149 = dma.done.wait [#allocation3], 1024  }
  0x37   :  { %1150 = vsyncadd [#allocation3], 4294966272 }
  0x38   :  { %1151 = dma.done.wait [#allocation5], 2048  }
  0x39   :  { %1152 = vsyncadd [#allocation5], 4294965248 }
  0x3a   :  { %1153 = dma.done.wait [#allocation8], 2048  }
  0x3b   :  { %1154 = vsyncadd [#allocation8], 4294965248  ;;  %v1162_v0 = vmov 0   ;;  %v1163_v1 = vmov 2   ;;  %v1164_v2 = vmov 0.0   ;;  %v113_v3 = vld [vmem:[%s1354_s0] sm:$0xff]  ;;  %v130_v21 = vlaneseq }
  0x3c   :  { %984 = vset.pattern.permute.xlu0 %v1162_v0  ;;  %996 = vset.pattern.permute.xlu1 %v1163_v1  ;;  %v114_v4 = vld [vmem:[%s1354_s0 + $0x8] sm:$0xff]  ;;  %v1009_v5 = vld [vmem:[#allocation2 + $0x38] sm:$0xff]   ;;  %v1010_v6 = vld [vmem:[#allocation2 + $0x30] sm:$0xff]   ;;  %v1165_v9 = vmov 1   ;;  %v1166_v10 = vmov 3   ;;  %vm1167_vm0 = vmmov 0  }
  0x3d   :  { %871 = vmatprep.subr.bf16.mxu0 %v1164_v2  ;;  %891 = vmatprep.subr.bf16.mxu1 %v1164_v2  ;;  %v985_v7 = vpack.i.bf16 %v114_v4, %v113_v3  ;;  %v1011_v8 = vld [vmem:[#allocation2 + $0x28] sm:$0xff]   ;;  %v1012_v11 = vld [vmem:[#allocation2 + $0x20] sm:$0xff]   ;;  %v1013_v12 = vld [vmem:[#allocation2 + $0x18] sm:$0xff]   ;;  %v131_v22 = vshrl.u32 %v130_v21, 7  ;;  %vm770_vm1 = vcmask 15360  }
  0x3e   :  { %872 = vmatpush3.bf16.msra.mxu0 %v1009_v5  ;;  %887 = vmatprep.mubr.msk.bf16.mxu0 %vm1167_vm0, %v1164_v2  ;;  %v1014_v13 = vld [vmem:[#allocation2 + $0x10] sm:$0xff]   ;;  %v1017_v14 = vld [vmem:[#allocation4 + $0x38] sm:$0xff]   ;;  %v1015_v15 = vld [vmem:[#allocation2 + $0x8] sm:$0xff]  }
  0x3f   :  { %873 = vmatprep.subr.bf16.mxu0 %v1164_v2  ;;  %986 = vperm.xlu0 %984, %v985_v7   ;;  %v1018_v16 = vld [vmem:[#allocation4 + $0x30] sm:$0xff]   ;;  %v1016_v17 = vld [vmem:[#allocation2] sm:$0xff]   ;;  %v1019_v18 = vld [vmem:[#allocation4 + $0x28] sm:$0xff]   ;;  %v132_v26 = vsub.s32 0, %v131_v22  ;;  %v146_v29 = vsub.s32 1, %v131_v22  ;;  %v164_v31 = vsub.s32 2, %v131_v22 }
  0x40   :  { %998 = vperm.xlu1 %996, %v985_v7   ;;  %907 = vmatprep.mubr.msk.bf16.mxu1 %vm1167_vm0, %v1164_v2  ;;  %v1020_v19 = vld [vmem:[#allocation4 + $0x20] sm:$0xff]   ;;  %v1021_v20 = vld [vmem:[#allocation4 + $0x18] sm:$0xff]   ;;  %v180_v32 = vsub.s32 3, %v131_v22  ;;  %v1022_v4 = vld [vmem:[#allocation4 + $0x10] sm:$0xff]  }
  0x41   :  { %892 = vmatpush3.bf16.msra.mxu1 %v1017_v14  ;;  %v118_v23 = vld [vmem:[%s1355_s1] sm:$0x1]  ;;  %v152_v24 = vld [vmem:[%s1355_s1] sm:$0x2]  ;;  %v1023_v5 = vld [vmem:[#allocation4 + $0x8] sm:$0xff]  }
  0x42   :  { %874 = vmatpush3.bf16.msra.mxu0 %v1010_v6  ;;  %893 = vmatprep.subr.bf16.mxu1 %v1164_v2  ;;  %v119_v25 = vunpack.c.l.bf16 %v118_v23  ;;  %v153_v30 = vunpack.c.l.bf16 %v152_v24  ;;  %v780_v59 = vld [vmem:[%s1356_s2] ss:$0 sm:$0xff]  ;;  %v1030_v22 = vld [vmem:[#allocation6 + $0x10] sm:$0xff]   ;;  %v1031_v23 = vld [vmem:[#allocation6 + $0x8] sm:$0xff]  }
  0x43   :  { %875 = vmatprep.subr.bf16.mxu0 %v1164_v2  ;;  %990 = vset.pattern.permute.xlu0 %v1165_v9  ;;  %v1024_v6 = vld [vmem:[#allocation4] sm:$0xff]   ;;  %v1027_v9 = vld [vmem:[#allocation6 + $0x28] sm:$0xff]  }
  0x44   :  { %1002 = vset.pattern.permute.xlu1 %v1166_v10  ;;  %992 = vperm.xlu0 %990, %v985_v7   ;;  %v133_v33 = vrot.slane %v119_v25, %v132_v26  ;;  %v147_v36 = vrot.slane %v119_v25, %v146_v29  ;;  %v165_v37 = vrot.slane %v153_v30, %v164_v31  ;;  %v1032_v24 = vld [vmem:[#allocation6] sm:$0xff]   ;;  %v1033_v25 = vld [vmem:[#allocation7 + $0x38] sm:$0xff]   ;;  %v1034_v26 = vld [vmem:[#allocation7 + $0x30] sm:$0xff]  }
  0x45   :  { %1004 = vperm.xlu1 %1002, %v985_v7   ;;  %894 = vmatpush3.bf16.msra.mxu1 %v1018_v16  ;;  %v181_v41 = vrot.slane %v153_v30, %v180_v32  ;;  %v1025_v7 = vld [vmem:[#allocation6 + $0x38] sm:$0xff]   ;;  %v790_v30 = vld [vmem:[%s1360_s6] ss:$0 sm:$0xff] }
  0x46   :  { %876 = vmatpush3.bf16.msra.mxu0 %v1011_v8  ;;  %895 = vmatprep.subr.bf16.mxu1 %v1164_v2  ;;  %v1026_v8 = vld [vmem:[#allocation6 + $0x30] sm:$0xff]   ;;  %v1037_v29 = vld [vmem:[#allocation7 + $0x18] sm:$0xff]  }
  0x47   :  { %877 = vmatprep.subr.bf16.mxu0 %v1164_v2 }
  0x48   :  { %1008 = vset.pattern.permute.xlu0 %v1166_v10  ;;  %v1028_v10 = vld [vmem:[#allocation6 + $0x20] sm:$0xff]  }
  0x49   :  { %896 = vmatpush3.bf16.msra.mxu1 %v1019_v18 }
  0x4a   :  { %878 = vmatpush3.bf16.msra.mxu0 %v1012_v11  ;;  %897 = vmatprep.subr.bf16.mxu1 %v1164_v2  ;;  %v1029_v11 = vld [vmem:[#allocation6 + $0x18] sm:$0xff]  }
  0x4b   :  { %879 = vmatprep.subr.bf16.mxu0 %v1164_v2 }
  0x4d   :  { %898 = vmatpush3.bf16.msra.mxu1 %v1020_v19 }
  0x4e   :  { %880 = vmatpush3.bf16.msra.mxu0 %v1013_v12  ;;  %899 = vmatprep.subr.bf16.mxu1 %v1164_v2  ;;  %v781_v12 = vld [vmem:[%s1358_s4] ss:$0 sm:$0xff] }
  0x4f   :  { %881 = vmatprep.subr.bf16.mxu0 %v1164_v2 }
  0x51   :  { %900 = vmatpush3.bf16.msra.mxu1 %v1021_v20 }
  0x52   :  { %882 = vmatpush3.bf16.msra.mxu0 %v1014_v13  ;;  %901 = vmatprep.subr.bf16.mxu1 %v1164_v2 }
  0x53   :  { %883 = vmatprep.subr.bf16.mxu0 %v1164_v2 }
  0x55   :  { %902 = vmatpush3.bf16.msra.mxu1 %v1022_v4 }
  0x56   :  { %884 = vmatpush3.bf16.msra.mxu0 %v1015_v15  ;;  %903 = vmatprep.subr.bf16.mxu1 %v1164_v2 }
  0x57   :  { %885 = vmatprep.subr.bf16.mxu0 %v1164_v2 }
  0x59   :  { %904 = vmatpush3.bf16.msra.mxu1 %v1023_v5 }
  0x5a   :  { %886 = vmatpush3.bf16.msra.mxu0 %v1016_v17  ;;  %905 = vmatprep.subr.bf16.mxu1 %v1164_v2 }
  0x5b   :  { %911 = vmatprep.subr.bf16.mxu0 %v1164_v2 }
  0x5d   :  { %906 = vmatpush3.bf16.msra.mxu1 %v1024_v6 }
  0x5e   :  { %931 = vmatprep.subr.bf16.mxu1 %v1164_v2 }
  0xba   :  { %v987_v27 = vpop.permute.xlu0 %986 }
  0xbb   :  { %v999_v28 = vpop.permute.xlu1 %998  ;;  %v989_v34 = vunpack.i.h.bf16 %v987_v27  ;;  %v988_v35 = vunpack.i.l.bf16 %v987_v27  ;;  %v1035_v27 = vld [vmem:[#allocation7 + $0x28] sm:$0xff]  }
  0xbc   :  { %v1001_v38 = vunpack.i.h.bf16 %v999_v28  ;;  %v1000_v39 = vunpack.i.l.bf16 %v999_v28  ;;  %v1036_v28 = vld [vmem:[#allocation7 + $0x20] sm:$0xff]  }
  0xbd   :  { %v135_v47 = vmul.f32 %v989_v34, %v133_v33  ;;  %v134_v48 = vmul.f32 %v988_v35, %v133_v33 }
  0xbe   :  { %v167_v51 = vmul.f32 %v1001_v38, %v165_v37  ;;  %v166_v52 = vmul.f32 %v1000_v39, %v165_v37 }
  0xbf   :  { %v993_v40 = vpop.permute.xlu0 %992 }
  0xc0   :  { %v1005_v42 = vpop.permute.xlu1 %1004  ;;  %v995_v43 = vunpack.i.h.bf16 %v993_v40  ;;  %v994_v44 = vunpack.i.l.bf16 %v993_v40  ;;  %v1038_v40 = vld [vmem:[#allocation7 + $0x10] sm:$0xff]  }
  0xc1   :  { %v1007_v45 = vunpack.i.h.bf16 %v1005_v42  ;;  %v1006_v46 = vunpack.i.l.bf16 %v1005_v42  ;;  %v1040_v42 = vld [vmem:[#allocation7] sm:$0xff]  }
  0xc2   :  { %v149_v49 = vmul.f32 %v995_v43, %v147_v36  ;;  %v148_v50 = vmul.f32 %v994_v44, %v147_v36  ;;  %v1041_v43 = vld [vmem:[#allocation9 + $0x38] sm:$0xff]   ;;  %v1042_v44 = vld [vmem:[#allocation9 + $0x30] sm:$0xff]  }
  0xc3   :  { %v183_v55 = vmul.f32 %v1007_v45, %v181_v41  ;;  %v182_v56 = vmul.f32 %v1006_v46, %v181_v41  ;;  %v1039_v41 = vld [vmem:[#allocation7 + $0x8] sm:$0xff]   ;;  %v1044_v46 = vld [vmem:[#allocation9 + $0x20] sm:$0xff]  }
  0xc4   :  { %v150_v53 = vadd.f32 %v148_v50, %v134_v48  ;;  %v151_v54 = vadd.f32 %v149_v49, %v135_v47  ;;  %v1043_v45 = vld [vmem:[#allocation9 + $0x28] sm:$0xff]   ;;  %v1045_v47 = vld [vmem:[#allocation9 + $0x18] sm:$0xff]   ;;  %v799_v48 = vld [vmem:[%s1362_s8] ss:$0 sm:$0xff] }
  0xc6   :  { %v168_v57 = vadd.f32 %v166_v52, %v150_v53  ;;  %v169_v58 = vadd.f32 %v167_v51, %v151_v54 }
  0xc8   :  { %v184_v60 = vadd.f32 %v182_v56, %v168_v57  ;;  %v185_v61 = vadd.f32 %v183_v55, %v169_v58  ;;  %v1046_v58 = vld [vmem:[#allocation9 + $0x10] sm:$0xff]  }
  0xca   :  { %v193_v62 = vadd.f32 %v780_v59, %v184_v60  ;;  %v194_v63 = vadd.f32 %v780_v59, %v185_v61  ;;  %v1047_v59 = vld [vmem:[#allocation9 + $0x8] sm:$0xff]   ;;  %v1048_v60 = vld [vmem:[#allocation9] sm:$0xff]  }
  0xcb   :  { %v808_v61 = vld [vmem:[%s1364_s10] ss:$0 sm:$0xff] }
  0xcc   :  { %v195_v0 = vmax.f32 %v193_v62, 0.0  ;;  %v196_v1 = vmax.f32 %v194_v63, 0.0 }
  0xce   :  { %v197_v3 = vpack.c.bf16 %v196_v1, %v195_v0 }
  0xd0   :  { %888 = vmatmul.mubr.bf16.vlgmr.msra.gmra.mxu0 %v197_v3 }
  0xd1   :  { %927 = vmatprep.mubr.msk.bf16.mxu0 %vm1167_vm0, %v1164_v2  ;;  %912 = vmatpush3.bf16.msra.mxu0 %v1025_v7 }
  0xd2   :  { %913 = vmatprep.subr.bf16.mxu0 %v1164_v2 }
  0xd5   :  { %914 = vmatpush3.bf16.msra.mxu0 %v1026_v8 }
  0xd6   :  { %915 = vmatprep.subr.bf16.mxu0 %v1164_v2 }
  0xd9   :  { %916 = vmatpush3.bf16.msra.mxu0 %v1027_v9 }
  0xda   :  { %917 = vmatprep.subr.bf16.mxu0 %v1164_v2 }
  0xdd   :  { %918 = vmatpush3.bf16.msra.mxu0 %v1028_v10 }
  0xde   :  { %919 = vmatprep.subr.bf16.mxu0 %v1164_v2 }
  0xe1   :  { %920 = vmatpush3.bf16.msra.mxu0 %v1029_v11 }
  0xe2   :  { %921 = vmatprep.subr.bf16.mxu0 %v1164_v2 }
  0xe5   :  { %922 = vmatpush3.bf16.msra.mxu0 %v1030_v22 }
  0xe6   :  { %923 = vmatprep.subr.bf16.mxu0 %v1164_v2 }
  0xe9   :  { %924 = vmatpush3.bf16.msra.mxu0 %v1031_v23 }
  0xea   :  { %925 = vmatprep.subr.bf16.mxu0 %v1164_v2 }
  0xed   :  { %926 = vmatpush3.bf16.msra.mxu0 %v1032_v24 }
  0xee   :  { %951 = vmatprep.subr.bf16.mxu0 %v1164_v2 }
 0x190   :  { %v303_v13 = vpop.f32.mrf.mxu0 }
 0x191   :  { %v304_v15 = vadd.f32 %v781_v12, %v303_v13 }
 0x192   :  { %v889_v14 = vpop.f32.mrf.mxu0 }
 0x193   :  { %v310_v19 = vmax.f32 %v304_v15, 0.0 }
 0x194   :  { %v306_v16 = vpop.f32.mrf.mxu0 }
 0x195   :  { %v307_v17 = vadd.f32 %v781_v12, %v306_v16 }
 0x196   :  { %v890_v18 = vpop.f32.mrf.mxu0 }
 0x197   :  { %v311_v20 = vmax.f32 %v307_v17, 0.0 }
 0x199   :  { %v312_v21 = vpack.c.bf16 %v311_v20, %v310_v19 }
 0x19b   :  { %908 = vmatmul.mubr.bf16.vlgmr.msra.gmra.mxu1 %v312_v21 }
 0x19c   :  { %947 = vmatprep.mubr.msk.bf16.mxu1 %vm1167_vm0, %v1164_v2  ;;  %932 = vmatpush3.bf16.msra.mxu1 %v1033_v25 }
 0x19d   :  { %933 = vmatprep.subr.bf16.mxu1 %v1164_v2 }
 0x1a0   :  { %934 = vmatpush3.bf16.msra.mxu1 %v1034_v26 }
 0x1a1   :  { %935 = vmatprep.subr.bf16.mxu1 %v1164_v2 }
 0x1a4   :  { %936 = vmatpush3.bf16.msra.mxu1 %v1035_v27 }
 0x1a5   :  { %937 = vmatprep.subr.bf16.mxu1 %v1164_v2 }
 0x1a8   :  { %938 = vmatpush3.bf16.msra.mxu1 %v1036_v28 }
 0x1a9   :  { %939 = vmatprep.subr.bf16.mxu1 %v1164_v2 }
 0x1ac   :  { %940 = vmatpush3.bf16.msra.mxu1 %v1037_v29 }
 0x1ad   :  { %941 = vmatprep.subr.bf16.mxu1 %v1164_v2 }
 0x1b0   :  { %942 = vmatpush3.bf16.msra.mxu1 %v1038_v40 }
 0x1b1   :  { %943 = vmatprep.subr.bf16.mxu1 %v1164_v2 }
 0x1b4   :  { %944 = vmatpush3.bf16.msra.mxu1 %v1039_v41 }
 0x1b5   :  { %945 = vmatprep.subr.bf16.mxu1 %v1164_v2 }
 0x1b8   :  { %946 = vmatpush3.bf16.msra.mxu1 %v1040_v42 }
 0x25b   :  { %v418_v31 = vpop.f32.mrf.mxu1 }
 0x25c   :  { %v419_v33 = vadd.f32 %v790_v30, %v418_v31 }
 0x25d   :  { %v909_v32 = vpop.f32.mrf.mxu1 }
 0x25e   :  { %v425_v37 = vmax.f32 %v419_v33, 0.0 }
 0x25f   :  { %v421_v34 = vpop.f32.mrf.mxu1 }
 0x260   :  { %v422_v35 = vadd.f32 %v790_v30, %v421_v34 }
 0x261   :  { %v910_v36 = vpop.f32.mrf.mxu1 }
 0x262   :  { %v426_v38 = vmax.f32 %v422_v35, 0.0 }
 0x264   :  { %v427_v39 = vpack.c.bf16 %v426_v38, %v425_v37 }
 0x266   :  { %928 = vmatmul.mubr.bf16.vlgmr.msra.gmra.mxu0 %v427_v39 }
 0x267   :  { %967 = vmatprep.mubr.msk.bf16.mxu0 %vm1167_vm0, %v1164_v2  ;;  %952 = vmatpush3.bf16.msra.mxu0 %v1041_v43 }
 0x268   :  { %953 = vmatprep.subr.bf16.mxu0 %v1164_v2 }
 0x26b   :  { %954 = vmatpush3.bf16.msra.mxu0 %v1042_v44 }
 0x26c   :  { %955 = vmatprep.subr.bf16.mxu0 %v1164_v2 }
 0x26f   :  { %956 = vmatpush3.bf16.msra.mxu0 %v1043_v45 }
 0x270   :  { %957 = vmatprep.subr.bf16.mxu0 %v1164_v2 }
 0x273   :  { %958 = vmatpush3.bf16.msra.mxu0 %v1044_v46 }
 0x274   :  { %959 = vmatprep.subr.bf16.mxu0 %v1164_v2 }
 0x277   :  { %960 = vmatpush3.bf16.msra.mxu0 %v1045_v47 }
 0x278   :  { %961 = vmatprep.subr.bf16.mxu0 %v1164_v2 }
 0x27b   :  { %962 = vmatpush3.bf16.msra.mxu0 %v1046_v58 }
 0x27c   :  { %963 = vmatprep.subr.bf16.mxu0 %v1164_v2 }
 0x27f   :  { %964 = vmatpush3.bf16.msra.mxu0 %v1047_v59 }
 0x280   :  { %965 = vmatprep.subr.bf16.mxu0 %v1164_v2  ;;  %v817_v2 = vld [vmem:[%s1366_s12] ss:$0 sm:$0xff] }
 0x283   :  { %966 = vmatpush3.bf16.msra.mxu0 %v1048_v60 }
 0x326   :  { %v533_v49 = vpop.f32.mrf.mxu0 }
 0x327   :  { %v534_v51 = vadd.f32 %v799_v48, %v533_v49 }
 0x328   :  { %v929_v50 = vpop.f32.mrf.mxu0 }
 0x329   :  { %v540_v55 = vmax.f32 %v534_v51, 0.0 }
 0x32a   :  { %v536_v52 = vpop.f32.mrf.mxu0 }
 0x32b   :  { %v537_v53 = vadd.f32 %v799_v48, %v536_v52 }
 0x32c   :  { %v930_v54 = vpop.f32.mrf.mxu0 }
 0x32d   :  { %v541_v56 = vmax.f32 %v537_v53, 0.0 }
 0x32f   :  { %v542_v57 = vpack.c.bf16 %v541_v56, %v540_v55 }
 0x331   :  { %948 = vmatmul.mubr.bf16.vlgmr.msra.gmra.mxu1 %v542_v57 }
 0x3f1   :  { %v648_v62 = vpop.f32.mrf.mxu1 }
 0x3f2   :  { %v649_v0 = vadd.f32 %v808_v61, %v648_v62 }
 0x3f3   :  { %v949_v63 = vpop.f32.mrf.mxu1 }
 0x3f4   :  { %v655_v5 = vmax.f32 %v649_v0, 0.0 }
 0x3f5   :  { %v651_v1 = vpop.f32.mrf.mxu1 }
 0x3f6   :  { %v652_v3 = vadd.f32 %v808_v61, %v651_v1 }
 0x3f7   :  { %v950_v4 = vpop.f32.mrf.mxu1 }
 0x3f8   :  { %v656_v6 = vmax.f32 %v652_v3, 0.0 }
 0x3fa   :  { %v657_v7 = vpack.c.bf16 %v656_v6, %v655_v5 }
 0x3fc   :  { %968 = vmatmul.mubr.bf16.vlgmr.msra.gmra.mxu0 %v657_v7 }
 0x4bc   :  { %v763_v8 = vpop.f32.mrf.mxu0 }
 0x4bd   :  { %v764_v9 = vadd.f32 %v817_v2, %v763_v8 }
 0x4be   :  { %v969_v10 = vpop.f32.mrf.mxu0 }
 0x4bf   :  { %771 = vst.msk [vmem:[%s1367_s13] sm:$0xff] %vm770_vm1, %v764_v9 }
 0x4c0   :  { %v766_v11 = vpop.f32.mrf.mxu0 }
 0x4c1   :  { %v767_v12 = vadd.f32 %v817_v2, %v766_v11 }
 0x4c2   :  { %v970_v13 = vpop.f32.mrf.mxu0 }
 0x4c3   :  { %772 = vst.msk [vmem:[%s1367_s13 + $0x8] sm:$0xff] %vm770_vm1, %v767_v12 }
 0x4c4   :  { %777 = vsyncpa [#allocation3], 1 }
 0x4c5   :  { %778 = vsyncpa [#allocation5], 1 }
 0x4c6   :  { %779 = vsyncpa [#allocation8], 1 }

</bundles_post_ra>
